<compile_context>
chip_gen: v6e
topology: v6e:2x2x1
jax: 0.10.0
libtpu: 0.0.40
codegen_flags: <defaults>
</compile_context>

<pallas_src>
import functools

import jax
import jax.numpy as jnp
from jax import lax
from jax.experimental import pallas as pl
from jax.experimental.pallas import tpu as pltpu


def _make_gru_kernel(seq_len, t_tile, unroll, masked):
    """Builds the GRU-recurrence kernel body for one time tile of the pipeline."""

    def kernel(x_ref, wih_ref, whh_ref, bias_ref, bhn_ref, h0_ref, out_ref, h_scr):
        # x_ref   : (t_tile, B, I) bf16 -- streamed input tile (double-buffered DMA)
        # wih_ref : (I, 3H)        bf16 -- W_ih^T, resident (constant block index)
        # whh_ref : (H, 3H)        bf16 -- W_hh^T, resident single bf16 MXU tile
        # bias_ref: (1, 3H)        f32  -- b_ih (all gates) + b_hh (r,z) folded
        # bhn_ref : (1, H)         f32  -- b_hn (sits inside r * (...), can't be folded)
        # h0_ref  : (B, H)         f32  -- initial hidden state
        # out_ref : (B, H)         f32  -- final hidden state (stored on the last tile)
        # h_scr   : (B, H)         f32  -- hidden-state carry across grid steps
        tile = pl.program_id(0)
        B, H = h_scr.shape

        @pl.when(tile == 0)
        def _init():
            h_scr[...] = h0_ref[...]

        # Hoisted loads / broadcasts (JAX does not CSE broadcast_in_dim inside the loop).
        wih = wih_ref[...]
        whh = whh_ref[...]
        bias = jnp.broadcast_to(bias_ref[...], (B, 3 * H))
        bhn = jnp.broadcast_to(bhn_ref[...], (B, H))
        t0 = tile * t_tile

        def step(t, h):
            # Fused input projection (bf16 operands, f32 accumulate).  x_t has no
            # recurrent dependence, so with unroll>1 the LLO scheduler can overlap the
            # x-dot of step t+1 with the h-dependent work of step t.
            gi = jnp.dot(x_ref[t], wih, preferred_element_type=jnp.float32) + bias
            gh = jnp.dot(h.astype(jnp.bfloat16), whh,
                         preferred_element_type=jnp.float32)
            # Compact gate packing: r / z / n occupy lanes [0:H), [H:2H), [2H:3H).
            r = jax.nn.sigmoid(gi[:, 0:H] + gh[:, 0:H])
            z = jax.nn.sigmoid(gi[:, H:2 * H] + gh[:, H:2 * H])
            n = jnp.tanh(gi[:, 2 * H:3 * H] + r * (gh[:, 2 * H:3 * H] + bhn))
            h_new = (1.0 - z) * n + z * h
            if masked:
                # Zero-padded timesteps past the true sequence length are no-ops.
                h_new = jnp.where(t0 + t < seq_len, h_new, h)
            return h_new

        h_final = lax.fori_loop(0, t_tile, step, h_scr[...], unroll=unroll)
        h_scr[...] = h_final

        @pl.when(tile == pl.num_programs(0) - 1)
        def _finalize():
            out_ref[...] = h_final

    return kernel


def gru_net_forward(x_btI, h0_1bh, params, *, t_tile=None, unroll=8):
    """GRUNet.forward: x (B, T, I) batch_first, h0 (1, B, H)  ->  (B, O)."""
    w_ih, w_hh, b_ih, b_hh, w_lin, b_lin = params
    B, T, I = x_btI.shape
    H = w_hh.shape[1]
    f32, bf16 = jnp.float32, jnp.bfloat16

    h0 = h0_1bh[0].astype(f32)                                   # (B, H)

    if T == 0:
        h_last = h0
    else:
        if t_tile is None:
            t_tile = min(T, 128)                                 # tiny per-tile VMEM; sweep for perf
        num_tiles = (T + t_tile - 1) // t_tile
        t_pad = num_tiles * t_tile

        # bf16 weights: single-pass MXU pushes, half the resident bytes; f32 accumulate.
        wih_t = jnp.transpose(w_ih).astype(bf16)                 # (I, 3H)
        whh_t = jnp.transpose(w_hh).astype(bf16)                 # (H, 3H) resident MXU tile

        # Fold b_ih (all gates) + b_hh (r,z gates) into one bias row; b_hn stays separate
        # because it sits inside r * (W_hn h + b_hn).
        bias = (b_ih.astype(f32).at[:2 * H].add(b_hh[:2 * H].astype(f32))).reshape(1, 3 * H)
        bhn = b_hh[2 * H:].astype(f32).reshape(1, H)

        # Transpose / cast the SMALL tensor (x, not a precomputed 3H-wide gi) to
        # time-major bf16; pad T to a tile multiple (padded steps masked in-kernel).
        x_tbI = jnp.transpose(x_btI, (1, 0, 2)).astype(bf16)     # (T, B, I)
        if t_pad != T:
            x_tbI = jnp.pad(x_tbI, ((0, t_pad - T), (0, 0), (0, 0)))

        kernel = _make_gru_kernel(seq_len=T, t_tile=t_tile,
                                  unroll=max(1, min(unroll, t_tile)),
                                  masked=(t_pad != T))

        grid_spec = pltpu.PrefetchScalarGridSpec(
            num_scalar_prefetch=0,
            grid=(num_tiles,),
            in_specs=[
                # Streamed, double-buffered input tile (the only per-tile DMA).
                pl.BlockSpec((t_tile, B, I), lambda i: (i, 0, 0),
                             pipeline_mode=pl.Buffered(2)),
                # Constant block index -> loaded once, resident across the whole grid.
                pl.BlockSpec((I, 3 * H), lambda i: (0, 0)),
                pl.BlockSpec((H, 3 * H), lambda i: (0, 0)),
                pl.BlockSpec((1, 3 * H), lambda i: (0, 0)),
                pl.BlockSpec((1, H), lambda i: (0, 0)),
                pl.BlockSpec((B, H), lambda i: (0, 0)),
            ],
            out_specs=pl.BlockSpec((B, H), lambda i: (0, 0)),
            scratch_shapes=[pltpu.VMEM((B, H), f32)],            # hidden-state carry
        )

        h_last = pl.pallas_call(
            kernel,
            out_shape=jax.ShapeDtypeStruct((B, H), f32),
            grid_spec=grid_spec,
            compiler_params=pltpu.CompilerParams(
                dimension_semantics=("arbitrary",),              # time axis is sequential
                vmem_limit_bytes=32 * 1024 * 1024,               # explicit budget: >= v5e default, < v7x physical
            ),
        )(x_tbI, wih_t, whh_t, bias, bhn, h0)

    # The final Linear runs exactly once on (B, H) -> leave it to XLA.
    return h_last @ jnp.transpose(w_lin).astype(f32) + b_lin.astype(f32)


def init_params(key, input_size, hidden_size, output_size):
    # Deterministic synthetic init (uniform, same shapes as torch.nn.GRU / nn.Linear).
    ks = jax.random.split(key, 6)
    k = 1.0 / jnp.sqrt(hidden_size)
    w_ih = jax.random.uniform(ks[0], (3 * hidden_size, input_size), jnp.float32, -k, k)
    w_hh = jax.random.uniform(ks[1], (3 * hidden_size, hidden_size), jnp.float32, -k, k)
    b_ih = jax.random.uniform(ks[2], (3 * hidden_size,), jnp.float32, -k, k)
    b_hh = jax.random.uniform(ks[3], (3 * hidden_size,), jnp.float32, -k, k)
    w_lin = jax.random.uniform(ks[4], (output_size, hidden_size), jnp.float32, -k, k)
    b_lin = jax.random.uniform(ks[5], (output_size,), jnp.float32, -k, k)
    return (w_ih, w_hh, b_ih, b_hh, w_lin, b_lin)


def gru_net_reference(x_btI, h0_1bh, params):
    # Pure-JAX f32 reference with torch.nn.GRU semantics (gate order r, z, n).
    w_ih, w_hh, b_ih, b_hh, w_lin, b_lin = params
    H = w_hh.shape[1]
    h = h0_1bh[0].astype(jnp.float32)
    for t in range(x_btI.shape[1]):
        x_t = x_btI[:, t, :].astype(jnp.float32)
        gi = x_t @ w_ih.T + b_ih
        gh = h @ w_hh.T + b_hh
        i_r, i_z, i_n = gi[:, :H], gi[:, H:2 * H], gi[:, 2 * H:]
        h_r, h_z, h_n = gh[:, :H], gh[:, H:2 * H], gh[:, 2 * H:]
        r = jax.nn.sigmoid(i_r + h_r)
        z = jax.nn.sigmoid(i_z + h_z)
        n = jnp.tanh(i_n + r * h_n)
        h = (1.0 - z) * n + z * h
    return h @ w_lin.T + b_lin


if __name__ == "__main__":
    input_size, hidden_size, output_size = 16, 32, 8
    key = jax.random.PRNGKey(0)
    k_x, k_h, k_p, k_x2, k_h2 = jax.random.split(key, 5)
    params = init_params(k_p, input_size, hidden_size, output_size)

    # Tolerance note: matmul operands are bf16 (f32 accumulate / f32 gate math), so we
    # validate against the f32 reference at a bf16-operand tolerance.
    ATOL = RTOL = 2e-2

    # Case 1: the module's toy shape (B=2, T=8) -> single time tile.
    B, T = 2, 8
    x = jax.random.normal(k_x, (B, T, input_size), jnp.float32)
    h0 = jax.random.normal(k_h, (1, B, hidden_size), jnp.float32)
    out = jax.block_until_ready(jax.jit(gru_net_forward)(x, h0, params))
    ref = gru_net_reference(x, h0, params)
    assert out.shape == (B, output_size)
    assert jnp.allclose(out, ref, atol=ATOL, rtol=RTOL), (out, ref)

    # Case 2: multi-tile pipeline with T padding + in-kernel masking (T=20, t_tile=8).
    B2, T2 = 2, 20
    x2 = jax.random.normal(k_x2, (B2, T2, input_size), jnp.float32)
    h02 = jax.random.normal(k_h2, (1, B2, hidden_size), jnp.float32)
    fwd2 = jax.jit(functools.partial(gru_net_forward, t_tile=8, unroll=4))
    out2 = jax.block_until_ready(fwd2(x2, h02, params))
    ref2 = gru_net_reference(x2, h02, params)
    assert out2.shape == (B2, output_size)
    assert jnp.allclose(out2, ref2, atol=ATOL, rtol=RTOL), (out2, ref2)

    print("KERNEL_OK")
</pallas_src>

<mosaic_0001>
module attributes {stable_mosaic.version = 11 : i64} {
  func.func @kernel(%arg0: i32, %arg1: memref<8x2x16xbf16, #tpu.memory_space<vmem>>, %arg2: memref<16x96xbf16, #tpu.memory_space<vmem>>, %arg3: memref<32x96xbf16, #tpu.memory_space<vmem>>, %arg4: memref<1x96xf32, #tpu.memory_space<vmem>>, %arg5: memref<1x32xf32, #tpu.memory_space<vmem>>, %arg6: memref<2x32xf32, #tpu.memory_space<vmem>>, %arg7: memref<2x32xf32, #tpu.memory_space<vmem>>, %arg8: memref<2x32xf32, #tpu.memory_space<vmem>>) attributes {dimension_semantics = [#tpu.dimension_semantics<arbitrary>], iteration_bounds = array<i64: 1>, scalar_prefetch = 0 : i64, scratch_operands = 1 : i64, tpu.core_type = #tpu.core_type<tc>, window_params = [{pipeline_mode = #tpu.pipeline_mode<double_buffered>, transform_indices = @transform_0, window_bounds = array<i64: 8, 2, 16>}, {pipeline_mode = #tpu.pipeline_mode<synchronous>, transform_indices = @transform_1, window_bounds = array<i64: 16, 96>}, {pipeline_mode = #tpu.pipeline_mode<synchronous>, transform_indices = @transform_2, window_bounds = array<i64: 32, 96>}, {pipeline_mode = #tpu.pipeline_mode<synchronous>, transform_indices = @transform_3, window_bounds = array<i64: 1, 96>}, {pipeline_mode = #tpu.pipeline_mode<synchronous>, transform_indices = @transform_4, window_bounds = array<i64: 1, 32>}, {pipeline_mode = #tpu.pipeline_mode<synchronous>, transform_indices = @transform_5, window_bounds = array<i64: 2, 32>}, {pipeline_mode = #tpu.pipeline_mode<synchronous>, transform_indices = @transform_6, window_bounds = array<i64: 2, 32>}]} {
    %c0_i32 = arith.constant 0 : i32
    %0 = arith.cmpi eq, %arg0, %c0_i32 : i32
    %1 = arith.extui %0 : i1 to i32
    %c0_i32_0 = arith.constant 0 : i32
    %2 = arith.cmpi ne, %1, %c0_i32_0 : i32
    scf.if %2 {
      %c0_70 = arith.constant 0 : index
      %c0_71 = arith.constant 0 : index
      %288 = vector.load %arg6[%c0_70, %c0_71] : memref<2x32xf32, #tpu.memory_space<vmem>>, vector<2x32xf32>
      %c0_72 = arith.constant 0 : index
      %c0_73 = arith.constant 0 : index
      %289 = vector.load %arg8[%c0_72, %c0_73] : memref<2x32xf32, #tpu.memory_space<vmem>>, vector<2x32xf32>
      tpu.vector_store %arg8[%c0_72, %c0_73], %288 {strides = array<i32>} : memref<2x32xf32, #tpu.memory_space<vmem>>, vector<2x32xf32>,
    } else {
    }
    %c0 = arith.constant 0 : index
    %c0_1 = arith.constant 0 : index
    %3 = vector.load %arg2[%c0, %c0_1] : memref<16x96xbf16, #tpu.memory_space<vmem>>, vector<16x96xbf16>
    %c0_2 = arith.constant 0 : index
    %c0_3 = arith.constant 0 : index
    %4 = vector.load %arg3[%c0_2, %c0_3] : memref<32x96xbf16, #tpu.memory_space<vmem>>, vector<32x96xbf16>
    %c0_4 = arith.constant 0 : index
    %c0_5 = arith.constant 0 : index
    %5 = vector.load %arg4[%c0_4, %c0_5] : memref<1x96xf32, #tpu.memory_space<vmem>>, vector<1x96xf32>
    %6 = vector.shape_cast %5 : vector<1x96xf32> to vector<1x96xf32>
    %7 = vector.broadcast %6 : vector<1x96xf32> to vector<2x96xf32>
    %c0_6 = arith.constant 0 : index
    %c0_7 = arith.constant 0 : index
    %8 = vector.load %arg5[%c0_6, %c0_7] : memref<1x32xf32, #tpu.memory_space<vmem>>, vector<1x32xf32>
    %9 = vector.shape_cast %8 : vector<1x32xf32> to vector<1x32xf32>
    %10 = vector.broadcast %9 : vector<1x32xf32> to vector<2x32xf32>
    %c0_8 = arith.constant 0 : index
    %c0_9 = arith.constant 0 : index
    %11 = vector.load %arg8[%c0_8, %c0_9] : memref<2x32xf32, #tpu.memory_space<vmem>>, vector<2x32xf32>
    %c0_i32_10 = arith.constant 0 : i32
    %12 = arith.index_cast %c0_i32_10 : i32 to index
    %c0_11 = arith.constant 0 : index
    %c0_12 = arith.constant 0 : index
    %13 = vector.load %arg1[%12, %c0_11, %c0_12] : memref<8x2x16xbf16, #tpu.memory_space<vmem>>, vector<1x2x16xbf16>
    %14 = vector.shape_cast %13 : vector<1x2x16xbf16> to vector<2x16xbf16>
    %cst = arith.constant dense<0.000000e+00> : vector<2x96xf32>
    %15 = tpu.matmul %14, %3, %cst {dimension_numbers = #tpu.dot_dimension_numbers<[1], [0], [0], [1], [0, 0, 1, 1], [], []>} : vector<2x16xbf16>, vector<16x96xbf16>, vector<2x96xf32> -> vector<2x96xf32>
    %16 = arith.addf %15, %7 : vector<2x96xf32>
    %17 = arith.truncf %11 : vector<2x32xf32> to vector<2x32xbf16>
    %cst_13 = arith.constant dense<0.000000e+00> : vector<2x96xf32>
    %18 = tpu.matmul %17, %4, %cst_13 {dimension_numbers = #tpu.dot_dimension_numbers<[1], [0], [0], [1], [0, 0, 1, 1], [], []>} : vector<2x32xbf16>, vector<32x96xbf16>, vector<2x96xf32> -> vector<2x96xf32>
    %19 = vector.extract_strided_slice %16 {offsets = [0, 0], sizes = [2, 32], strides = [1, 1]} : vector<2x96xf32> to vector<2x32xf32>
    %20 = vector.extract_strided_slice %18 {offsets = [0, 0], sizes = [2, 32], strides = [1, 1]} : vector<2x96xf32> to vector<2x32xf32>
    %21 = arith.addf %19, %20 : vector<2x32xf32>
    %22 = arith.negf %21 : vector<2x32xf32>
    %23 = math.exp %22 : vector<2x32xf32>
    %cst_14 = arith.constant 1.000000e+00 : f32
    %24 = vector.broadcast %cst_14 : f32 to vector<2x32xf32>
    %25 = arith.addf %24, %23 : vector<2x32xf32>
    %26 = arith.divf %24, %25 : vector<2x32xf32>
    %27 = vector.extract_strided_slice %16 {offsets = [0, 32], sizes = [2, 32], strides = [1, 1]} : vector<2x96xf32> to vector<2x32xf32>
    %28 = vector.extract_strided_slice %18 {offsets = [0, 32], sizes = [2, 32], strides = [1, 1]} : vector<2x96xf32> to vector<2x32xf32>
    %29 = arith.addf %27, %28 : vector<2x32xf32>
    %30 = arith.negf %29 : vector<2x32xf32>
    %31 = math.exp %30 : vector<2x32xf32>
    %cst_15 = arith.constant 1.000000e+00 : f32
    %32 = vector.broadcast %cst_15 : f32 to vector<2x32xf32>
    %33 = arith.addf %32, %31 : vector<2x32xf32>
    %34 = arith.divf %32, %33 : vector<2x32xf32>
    %35 = vector.extract_strided_slice %16 {offsets = [0, 64], sizes = [2, 32], strides = [1, 1]} : vector<2x96xf32> to vector<2x32xf32>
    %36 = vector.extract_strided_slice %18 {offsets = [0, 64], sizes = [2, 32], strides = [1, 1]} : vector<2x96xf32> to vector<2x32xf32>
    %37 = arith.addf %36, %10 : vector<2x32xf32>
    %38 = arith.mulf %26, %37 : vector<2x32xf32>
    %39 = arith.addf %35, %38 : vector<2x32xf32>
    %40 = math.tanh %39 : vector<2x32xf32>
    %cst_16 = arith.constant 1.000000e+00 : f32
    %41 = vector.broadcast %cst_16 : f32 to vector<2x32xf32>
    %42 = arith.subf %41, %34 : vector<2x32xf32>
    %43 = arith.mulf %42, %40 : vector<2x32xf32>
    %44 = arith.mulf %34, %11 : vector<2x32xf32>
    %45 = arith.addf %43, %44 : vector<2x32xf32>
    %c1_i32 = arith.constant 1 : i32
    %46 = arith.index_cast %c1_i32 : i32 to index
    %c0_17 = arith.constant 0 : index
    %c0_18 = arith.constant 0 : index
    %47 = vector.load %arg1[%46, %c0_17, %c0_18] : memref<8x2x16xbf16, #tpu.memory_space<vmem>>, vector<1x2x16xbf16>
    %48 = vector.shape_cast %47 : vector<1x2x16xbf16> to vector<2x16xbf16>
    %cst_19 = arith.constant dense<0.000000e+00> : vector<2x96xf32>
    %49 = tpu.matmul %48, %3, %cst_19 {dimension_numbers = #tpu.dot_dimension_numbers<[1], [0], [0], [1], [0, 0, 1, 1], [], []>} : vector<2x16xbf16>, vector<16x96xbf16>, vector<2x96xf32> -> vector<2x96xf32>
    %50 = arith.addf %49, %7 : vector<2x96xf32>
    %51 = arith.truncf %45 : vector<2x32xf32> to vector<2x32xbf16>
    %cst_20 = arith.constant dense<0.000000e+00> : vector<2x96xf32>
    %52 = tpu.matmul %51, %4, %cst_20 {dimension_numbers = #tpu.dot_dimension_numbers<[1], [0], [0], [1], [0, 0, 1, 1], [], []>} : vector<2x32xbf16>, vector<32x96xbf16>, vector<2x96xf32> -> vector<2x96xf32>
    %53 = vector.extract_strided_slice %50 {offsets = [0, 0], sizes = [2, 32], strides = [1, 1]} : vector<2x96xf32> to vector<2x32xf32>
    %54 = vector.extract_strided_slice %52 {offsets = [0, 0], sizes = [2, 32], strides = [1, 1]} : vector<2x96xf32> to vector<2x32xf32>
    %55 = arith.addf %53, %54 : vector<2x32xf32>
    %56 = arith.negf %55 : vector<2x32xf32>
    %57 = math.exp %56 : vector<2x32xf32>
    %cst_21 = arith.constant 1.000000e+00 : f32
    %58 = vector.broadcast %cst_21 : f32 to vector<2x32xf32>
    %59 = arith.addf %58, %57 : vector<2x32xf32>
    %60 = arith.divf %58, %59 : vector<2x32xf32>
    %61 = vector.extract_strided_slice %50 {offsets = [0, 32], sizes = [2, 32], strides = [1, 1]} : vector<2x96xf32> to vector<2x32xf32>
    %62 = vector.extract_strided_slice %52 {offsets = [0, 32], sizes = [2, 32], strides = [1, 1]} : vector<2x96xf32> to vector<2x32xf32>
    %63 = arith.addf %61, %62 : vector<2x32xf32>
    %64 = arith.negf %63 : vector<2x32xf32>
    %65 = math.exp %64 : vector<2x32xf32>
    %cst_22 = arith.constant 1.000000e+00 : f32
    %66 = vector.broadcast %cst_22 : f32 to vector<2x32xf32>
    %67 = arith.addf %66, %65 : vector<2x32xf32>
    %68 = arith.divf %66, %67 : vector<2x32xf32>
    %69 = vector.extract_strided_slice %50 {offsets = [0, 64], sizes = [2, 32], strides = [1, 1]} : vector<2x96xf32> to vector<2x32xf32>
    %70 = vector.extract_strided_slice %52 {offsets = [0, 64], sizes = [2, 32], strides = [1, 1]} : vector<2x96xf32> to vector<2x32xf32>
    %71 = arith.addf %70, %10 : vector<2x32xf32>
    %72 = arith.mulf %60, %71 : vector<2x32xf32>
    %73 = arith.addf %69, %72 : vector<2x32xf32>
    %74 = math.tanh %73 : vector<2x32xf32>
    %cst_23 = arith.constant 1.000000e+00 : f32
    %75 = vector.broadcast %cst_23 : f32 to vector<2x32xf32>
    %76 = arith.subf %75, %68 : vector<2x32xf32>
    %77 = arith.mulf %76, %74 : vector<2x32xf32>
    %78 = arith.mulf %68, %45 : vector<2x32xf32>
    %79 = arith.addf %77, %78 : vector<2x32xf32>
    %c2_i32 = arith.constant 2 : i32
    %80 = arith.index_cast %c2_i32 : i32 to index
    %c0_24 = arith.constant 0 : index
    %c0_25 = arith.constant 0 : index
    %81 = vector.load %arg1[%80, %c0_24, %c0_25] : memref<8x2x16xbf16, #tpu.memory_space<vmem>>, vector<1x2x16xbf16>
    %82 = vector.shape_cast %81 : vector<1x2x16xbf16> to vector<2x16xbf16>
    %cst_26 = arith.constant dense<0.000000e+00> : vector<2x96xf32>
    %83 = tpu.matmul %82, %3, %cst_26 {dimension_numbers = #tpu.dot_dimension_numbers<[1], [0], [0], [1], [0, 0, 1, 1], [], []>} : vector<2x16xbf16>, vector<16x96xbf16>, vector<2x96xf32> -> vector<2x96xf32>
    %84 = arith.addf %83, %7 : vector<2x96xf32>
    %85 = arith.truncf %79 : vector<2x32xf32> to vector<2x32xbf16>
    %cst_27 = arith.constant dense<0.000000e+00> : vector<2x96xf32>
    %86 = tpu.matmul %85, %4, %cst_27 {dimension_numbers = #tpu.dot_dimension_numbers<[1], [0], [0], [1], [0, 0, 1, 1], [], []>} : vector<2x32xbf16>, vector<32x96xbf16>, vector<2x96xf32> -> vector<2x96xf32>
    %87 = vector.extract_strided_slice %84 {offsets = [0, 0], sizes = [2, 32], strides = [1, 1]} : vector<2x96xf32> to vector<2x32xf32>
    %88 = vector.extract_strided_slice %86 {offsets = [0, 0], sizes = [2, 32], strides = [1, 1]} : vector<2x96xf32> to vector<2x32xf32>
    %89 = arith.addf %87, %88 : vector<2x32xf32>
    %90 = arith.negf %89 : vector<2x32xf32>
    %91 = math.exp %90 : vector<2x32xf32>
    %cst_28 = arith.constant 1.000000e+00 : f32
    %92 = vector.broadcast %cst_28 : f32 to vector<2x32xf32>
    %93 = arith.addf %92, %91 : vector<2x32xf32>
    %94 = arith.divf %92, %93 : vector<2x32xf32>
    %95 = vector.extract_strided_slice %84 {offsets = [0, 32], sizes = [2, 32], strides = [1, 1]} : vector<2x96xf32> to vector<2x32xf32>
    %96 = vector.extract_strided_slice %86 {offsets = [0, 32], sizes = [2, 32], strides = [1, 1]} : vector<2x96xf32> to vector<2x32xf32>
    %97 = arith.addf %95, %96 : vector<2x32xf32>
    %98 = arith.negf %97 : vector<2x32xf32>
    %99 = math.exp %98 : vector<2x32xf32>
    %cst_29 = arith.constant 1.000000e+00 : f32
    %100 = vector.broadcast %cst_29 : f32 to vector<2x32xf32>
    %101 = arith.addf %100, %99 : vector<2x32xf32>
    %102 = arith.divf %100, %101 : vector<2x32xf32>
    %103 = vector.extract_strided_slice %84 {offsets = [0, 64], sizes = [2, 32], strides = [1, 1]} : vector<2x96xf32> to vector<2x32xf32>
    %104 = vector.extract_strided_slice %86 {offsets = [0, 64], sizes = [2, 32], strides = [1, 1]} : vector<2x96xf32> to vector<2x32xf32>
    %105 = arith.addf %104, %10 : vector<2x32xf32>
    %106 = arith.mulf %94, %105 : vector<2x32xf32>
    %107 = arith.addf %103, %106 : vector<2x32xf32>
    %108 = math.tanh %107 : vector<2x32xf32>
    %cst_30 = arith.constant 1.000000e+00 : f32
    %109 = vector.broadcast %cst_30 : f32 to vector<2x32xf32>
    %110 = arith.subf %109, %102 : vector<2x32xf32>
    %111 = arith.mulf %110, %108 : vector<2x32xf32>
    %112 = arith.mulf %102, %79 : vector<2x32xf32>
    %113 = arith.addf %111, %112 : vector<2x32xf32>
    %c3_i32 = arith.constant 3 : i32
    %114 = arith.index_cast %c3_i32 : i32 to index
    %c0_31 = arith.constant 0 : index
    %c0_32 = arith.constant 0 : index
    %115 = vector.load %arg1[%114, %c0_31, %c0_32] : memref<8x2x16xbf16, #tpu.memory_space<vmem>>, vector<1x2x16xbf16>
    %116 = vector.shape_cast %115 : vector<1x2x16xbf16> to vector<2x16xbf16>
    %cst_33 = arith.constant dense<0.000000e+00> : vector<2x96xf32>
    %117 = tpu.matmul %116, %3, %cst_33 {dimension_numbers = #tpu.dot_dimension_numbers<[1], [0], [0], [1], [0, 0, 1, 1], [], []>} : vector<2x16xbf16>, vector<16x96xbf16>, vector<2x96xf32> -> vector<2x96xf32>
    %118 = arith.addf %117, %7 : vector<2x96xf32>
    %119 = arith.truncf %113 : vector<2x32xf32> to vector<2x32xbf16>
    %cst_34 = arith.constant dense<0.000000e+00> : vector<2x96xf32>
    %120 = tpu.matmul %119, %4, %cst_34 {dimension_numbers = #tpu.dot_dimension_numbers<[1], [0], [0], [1], [0, 0, 1, 1], [], []>} : vector<2x32xbf16>, vector<32x96xbf16>, vector<2x96xf32> -> vector<2x96xf32>
    %121 = vector.extract_strided_slice %118 {offsets = [0, 0], sizes = [2, 32], strides = [1, 1]} : vector<2x96xf32> to vector<2x32xf32>
    %122 = vector.extract_strided_slice %120 {offsets = [0, 0], sizes = [2, 32], strides = [1, 1]} : vector<2x96xf32> to vector<2x32xf32>
    %123 = arith.addf %121, %122 : vector<2x32xf32>
    %124 = arith.negf %123 : vector<2x32xf32>
    %125 = math.exp %124 : vector<2x32xf32>
    %cst_35 = arith.constant 1.000000e+00 : f32
    %126 = vector.broadcast %cst_35 : f32 to vector<2x32xf32>
    %127 = arith.addf %126, %125 : vector<2x32xf32>
    %128 = arith.divf %126, %127 : vector<2x32xf32>
    %129 = vector.extract_strided_slice %118 {offsets = [0, 32], sizes = [2, 32], strides = [1, 1]} : vector<2x96xf32> to vector<2x32xf32>
    %130 = vector.extract_strided_slice %120 {offsets = [0, 32], sizes = [2, 32], strides = [1, 1]} : vector<2x96xf32> to vector<2x32xf32>
    %131 = arith.addf %129, %130 : vector<2x32xf32>
    %132 = arith.negf %131 : vector<2x32xf32>
    %133 = math.exp %132 : vector<2x32xf32>
    %cst_36 = arith.constant 1.000000e+00 : f32
    %134 = vector.broadcast %cst_36 : f32 to vector<2x32xf32>
    %135 = arith.addf %134, %133 : vector<2x32xf32>
    %136 = arith.divf %134, %135 : vector<2x32xf32>
    %137 = vector.extract_strided_slice %118 {offsets = [0, 64], sizes = [2, 32], strides = [1, 1]} : vector<2x96xf32> to vector<2x32xf32>
    %138 = vector.extract_strided_slice %120 {offsets = [0, 64], sizes = [2, 32], strides = [1, 1]} : vector<2x96xf32> to vector<2x32xf32>
    %139 = arith.addf %138, %10 : vector<2x32xf32>
    %140 = arith.mulf %128, %139 : vector<2x32xf32>
    %141 = arith.addf %137, %140 : vector<2x32xf32>
    %142 = math.tanh %141 : vector<2x32xf32>
    %cst_37 = arith.constant 1.000000e+00 : f32
    %143 = vector.broadcast %cst_37 : f32 to vector<2x32xf32>
    %144 = arith.subf %143, %136 : vector<2x32xf32>
    %145 = arith.mulf %144, %142 : vector<2x32xf32>
    %146 = arith.mulf %136, %113 : vector<2x32xf32>
    %147 = arith.addf %145, %146 : vector<2x32xf32>
    %c4_i32 = arith.constant 4 : i32
    %148 = arith.index_cast %c4_i32 : i32 to index
    %c0_38 = arith.constant 0 : index
    %c0_39 = arith.constant 0 : index
    %149 = vector.load %arg1[%148, %c0_38, %c0_39] : memref<8x2x16xbf16, #tpu.memory_space<vmem>>, vector<1x2x16xbf16>
    %150 = vector.shape_cast %149 : vector<1x2x16xbf16> to vector<2x16xbf16>
    %cst_40 = arith.constant dense<0.000000e+00> : vector<2x96xf32>
    %151 = tpu.matmul %150, %3, %cst_40 {dimension_numbers = #tpu.dot_dimension_numbers<[1], [0], [0], [1], [0, 0, 1, 1], [], []>} : vector<2x16xbf16>, vector<16x96xbf16>, vector<2x96xf32> -> vector<2x96xf32>
    %152 = arith.addf %151, %7 : vector<2x96xf32>
    %153 = arith.truncf %147 : vector<2x32xf32> to vector<2x32xbf16>
    %cst_41 = arith.constant dense<0.000000e+00> : vector<2x96xf32>
    %154 = tpu.matmul %153, %4, %cst_41 {dimension_numbers = #tpu.dot_dimension_numbers<[1], [0], [0], [1], [0, 0, 1, 1], [], []>} : vector<2x32xbf16>, vector<32x96xbf16>, vector<2x96xf32> -> vector<2x96xf32>
    %155 = vector.extract_strided_slice %152 {offsets = [0, 0], sizes = [2, 32], strides = [1, 1]} : vector<2x96xf32> to vector<2x32xf32>
    %156 = vector.extract_strided_slice %154 {offsets = [0, 0], sizes = [2, 32], strides = [1, 1]} : vector<2x96xf32> to vector<2x32xf32>
    %157 = arith.addf %155, %156 : vector<2x32xf32>
    %158 = arith.negf %157 : vector<2x32xf32>
    %159 = math.exp %158 : vector<2x32xf32>
    %cst_42 = arith.constant 1.000000e+00 : f32
    %160 = vector.broadcast %cst_42 : f32 to vector<2x32xf32>
    %161 = arith.addf %160, %159 : vector<2x32xf32>
    %162 = arith.divf %160, %161 : vector<2x32xf32>
    %163 = vector.extract_strided_slice %152 {offsets = [0, 32], sizes = [2, 32], strides = [1, 1]} : vector<2x96xf32> to vector<2x32xf32>
    %164 = vector.extract_strided_slice %154 {offsets = [0, 32], sizes = [2, 32], strides = [1, 1]} : vector<2x96xf32> to vector<2x32xf32>
    %165 = arith.addf %163, %164 : vector<2x32xf32>
    %166 = arith.negf %165 : vector<2x32xf32>
    %167 = math.exp %166 : vector<2x32xf32>
    %cst_43 = arith.constant 1.000000e+00 : f32
    %168 = vector.broadcast %cst_43 : f32 to vector<2x32xf32>
    %169 = arith.addf %168, %167 : vector<2x32xf32>
    %170 = arith.divf %168, %169 : vector<2x32xf32>
    %171 = vector.extract_strided_slice %152 {offsets = [0, 64], sizes = [2, 32], strides = [1, 1]} : vector<2x96xf32> to vector<2x32xf32>
    %172 = vector.extract_strided_slice %154 {offsets = [0, 64], sizes = [2, 32], strides = [1, 1]} : vector<2x96xf32> to vector<2x32xf32>
    %173 = arith.addf %172, %10 : vector<2x32xf32>
    %174 = arith.mulf %162, %173 : vector<2x32xf32>
    %175 = arith.addf %171, %174 : vector<2x32xf32>
    %176 = math.tanh %175 : vector<2x32xf32>
    %cst_44 = arith.constant 1.000000e+00 : f32
    %177 = vector.broadcast %cst_44 : f32 to vector<2x32xf32>
    %178 = arith.subf %177, %170 : vector<2x32xf32>
    %179 = arith.mulf %178, %176 : vector<2x32xf32>
    %180 = arith.mulf %170, %147 : vector<2x32xf32>
    %181 = arith.addf %179, %180 : vector<2x32xf32>
    %c5_i32 = arith.constant 5 : i32
    %182 = arith.index_cast %c5_i32 : i32 to index
    %c0_45 = arith.constant 0 : index
    %c0_46 = arith.constant 0 : index
    %183 = vector.load %arg1[%182, %c0_45, %c0_46] : memref<8x2x16xbf16, #tpu.memory_space<vmem>>, vector<1x2x16xbf16>
    %184 = vector.shape_cast %183 : vector<1x2x16xbf16> to vector<2x16xbf16>
    %cst_47 = arith.constant dense<0.000000e+00> : vector<2x96xf32>
    %185 = tpu.matmul %184, %3, %cst_47 {dimension_numbers = #tpu.dot_dimension_numbers<[1], [0], [0], [1], [0, 0, 1, 1], [], []>} : vector<2x16xbf16>, vector<16x96xbf16>, vector<2x96xf32> -> vector<2x96xf32>
    %186 = arith.addf %185, %7 : vector<2x96xf32>
    %187 = arith.truncf %181 : vector<2x32xf32> to vector<2x32xbf16>
    %cst_48 = arith.constant dense<0.000000e+00> : vector<2x96xf32>
    %188 = tpu.matmul %187, %4, %cst_48 {dimension_numbers = #tpu.dot_dimension_numbers<[1], [0], [0], [1], [0, 0, 1, 1], [], []>} : vector<2x32xbf16>, vector<32x96xbf16>, vector<2x96xf32> -> vector<2x96xf32>
    %189 = vector.extract_strided_slice %186 {offsets = [0, 0], sizes = [2, 32], strides = [1, 1]} : vector<2x96xf32> to vector<2x32xf32>
    %190 = vector.extract_strided_slice %188 {offsets = [0, 0], sizes = [2, 32], strides = [1, 1]} : vector<2x96xf32> to vector<2x32xf32>
    %191 = arith.addf %189, %190 : vector<2x32xf32>
    %192 = arith.negf %191 : vector<2x32xf32>
    %193 = math.exp %192 : vector<2x32xf32>
    %cst_49 = arith.constant 1.000000e+00 : f32
    %194 = vector.broadcast %cst_49 : f32 to vector<2x32xf32>
    %195 = arith.addf %194, %193 : vector<2x32xf32>
    %196 = arith.divf %194, %195 : vector<2x32xf32>
    %197 = vector.extract_strided_slice %186 {offsets = [0, 32], sizes = [2, 32], strides = [1, 1]} : vector<2x96xf32> to vector<2x32xf32>
    %198 = vector.extract_strided_slice %188 {offsets = [0, 32], sizes = [2, 32], strides = [1, 1]} : vector<2x96xf32> to vector<2x32xf32>
    %199 = arith.addf %197, %198 : vector<2x32xf32>
    %200 = arith.negf %199 : vector<2x32xf32>
    %201 = math.exp %200 : vector<2x32xf32>
    %cst_50 = arith.constant 1.000000e+00 : f32
    %202 = vector.broadcast %cst_50 : f32 to vector<2x32xf32>
    %203 = arith.addf %202, %201 : vector<2x32xf32>
    %204 = arith.divf %202, %203 : vector<2x32xf32>
    %205 = vector.extract_strided_slice %186 {offsets = [0, 64], sizes = [2, 32], strides = [1, 1]} : vector<2x96xf32> to vector<2x32xf32>
    %206 = vector.extract_strided_slice %188 {offsets = [0, 64], sizes = [2, 32], strides = [1, 1]} : vector<2x96xf32> to vector<2x32xf32>
    %207 = arith.addf %206, %10 : vector<2x32xf32>
    %208 = arith.mulf %196, %207 : vector<2x32xf32>
    %209 = arith.addf %205, %208 : vector<2x32xf32>
    %210 = math.tanh %209 : vector<2x32xf32>
    %cst_51 = arith.constant 1.000000e+00 : f32
    %211 = vector.broadcast %cst_51 : f32 to vector<2x32xf32>
    %212 = arith.subf %211, %204 : vector<2x32xf32>
    %213 = arith.mulf %212, %210 : vector<2x32xf32>
    %214 = arith.mulf %204, %181 : vector<2x32xf32>
    %215 = arith.addf %213, %214 : vector<2x32xf32>
    %c6_i32 = arith.constant 6 : i32
    %216 = arith.index_cast %c6_i32 : i32 to index
    %c0_52 = arith.constant 0 : index
    %c0_53 = arith.constant 0 : index
    %217 = vector.load %arg1[%216, %c0_52, %c0_53] : memref<8x2x16xbf16, #tpu.memory_space<vmem>>, vector<1x2x16xbf16>
    %218 = vector.shape_cast %217 : vector<1x2x16xbf16> to vector<2x16xbf16>
    %cst_54 = arith.constant dense<0.000000e+00> : vector<2x96xf32>
    %219 = tpu.matmul %218, %3, %cst_54 {dimension_numbers = #tpu.dot_dimension_numbers<[1], [0], [0], [1], [0, 0, 1, 1], [], []>} : vector<2x16xbf16>, vector<16x96xbf16>, vector<2x96xf32> -> vector<2x96xf32>
    %220 = arith.addf %219, %7 : vector<2x96xf32>
    %221 = arith.truncf %215 : vector<2x32xf32> to vector<2x32xbf16>
    %cst_55 = arith.constant dense<0.000000e+00> : vector<2x96xf32>
    %222 = tpu.matmul %221, %4, %cst_55 {dimension_numbers = #tpu.dot_dimension_numbers<[1], [0], [0], [1], [0, 0, 1, 1], [], []>} : vector<2x32xbf16>, vector<32x96xbf16>, vector<2x96xf32> -> vector<2x96xf32>
    %223 = vector.extract_strided_slice %220 {offsets = [0, 0], sizes = [2, 32], strides = [1, 1]} : vector<2x96xf32> to vector<2x32xf32>
    %224 = vector.extract_strided_slice %222 {offsets = [0, 0], sizes = [2, 32], strides = [1, 1]} : vector<2x96xf32> to vector<2x32xf32>
    %225 = arith.addf %223, %224 : vector<2x32xf32>
    %226 = arith.negf %225 : vector<2x32xf32>
    %227 = math.exp %226 : vector<2x32xf32>
    %cst_56 = arith.constant 1.000000e+00 : f32
    %228 = vector.broadcast %cst_56 : f32 to vector<2x32xf32>
    %229 = arith.addf %228, %227 : vector<2x32xf32>
    %230 = arith.divf %228, %229 : vector<2x32xf32>
    %231 = vector.extract_strided_slice %220 {offsets = [0, 32], sizes = [2, 32], strides = [1, 1]} : vector<2x96xf32> to vector<2x32xf32>
    %232 = vector.extract_strided_slice %222 {offsets = [0, 32], sizes = [2, 32], strides = [1, 1]} : vector<2x96xf32> to vector<2x32xf32>
    %233 = arith.addf %231, %232 : vector<2x32xf32>
    %234 = arith.negf %233 : vector<2x32xf32>
    %235 = math.exp %234 : vector<2x32xf32>
    %cst_57 = arith.constant 1.000000e+00 : f32
    %236 = vector.broadcast %cst_57 : f32 to vector<2x32xf32>
    %237 = arith.addf %236, %235 : vector<2x32xf32>
    %238 = arith.divf %236, %237 : vector<2x32xf32>
    %239 = vector.extract_strided_slice %220 {offsets = [0, 64], sizes = [2, 32], strides = [1, 1]} : vector<2x96xf32> to vector<2x32xf32>
    %240 = vector.extract_strided_slice %222 {offsets = [0, 64], sizes = [2, 32], strides = [1, 1]} : vector<2x96xf32> to vector<2x32xf32>
    %241 = arith.addf %240, %10 : vector<2x32xf32>
    %242 = arith.mulf %230, %241 : vector<2x32xf32>
    %243 = arith.addf %239, %242 : vector<2x32xf32>
    %244 = math.tanh %243 : vector<2x32xf32>
    %cst_58 = arith.constant 1.000000e+00 : f32
    %245 = vector.broadcast %cst_58 : f32 to vector<2x32xf32>
    %246 = arith.subf %245, %238 : vector<2x32xf32>
    %247 = arith.mulf %246, %244 : vector<2x32xf32>
    %248 = arith.mulf %238, %215 : vector<2x32xf32>
    %249 = arith.addf %247, %248 : vector<2x32xf32>
    %c7_i32 = arith.constant 7 : i32
    %250 = arith.index_cast %c7_i32 : i32 to index
    %c0_59 = arith.constant 0 : index
    %c0_60 = arith.constant 0 : index
    %251 = vector.load %arg1[%250, %c0_59, %c0_60] : memref<8x2x16xbf16, #tpu.memory_space<vmem>>, vector<1x2x16xbf16>
    %252 = vector.shape_cast %251 : vector<1x2x16xbf16> to vector<2x16xbf16>
    %cst_61 = arith.constant dense<0.000000e+00> : vector<2x96xf32>
    %253 = tpu.matmul %252, %3, %cst_61 {dimension_numbers = #tpu.dot_dimension_numbers<[1], [0], [0], [1], [0, 0, 1, 1], [], []>} : vector<2x16xbf16>, vector<16x96xbf16>, vector<2x96xf32> -> vector<2x96xf32>
    %254 = arith.addf %253, %7 : vector<2x96xf32>
    %255 = arith.truncf %249 : vector<2x32xf32> to vector<2x32xbf16>
    %cst_62 = arith.constant dense<0.000000e+00> : vector<2x96xf32>
    %256 = tpu.matmul %255, %4, %cst_62 {dimension_numbers = #tpu.dot_dimension_numbers<[1], [0], [0], [1], [0, 0, 1, 1], [], []>} : vector<2x32xbf16>, vector<32x96xbf16>, vector<2x96xf32> -> vector<2x96xf32>
    %257 = vector.extract_strided_slice %254 {offsets = [0, 0], sizes = [2, 32], strides = [1, 1]} : vector<2x96xf32> to vector<2x32xf32>
    %258 = vector.extract_strided_slice %256 {offsets = [0, 0], sizes = [2, 32], strides = [1, 1]} : vector<2x96xf32> to vector<2x32xf32>
    %259 = arith.addf %257, %258 : vector<2x32xf32>
    %260 = arith.negf %259 : vector<2x32xf32>
    %261 = math.exp %260 : vector<2x32xf32>
    %cst_63 = arith.constant 1.000000e+00 : f32
    %262 = vector.broadcast %cst_63 : f32 to vector<2x32xf32>
    %263 = arith.addf %262, %261 : vector<2x32xf32>
    %264 = arith.divf %262, %263 : vector<2x32xf32>
    %265 = vector.extract_strided_slice %254 {offsets = [0, 32], sizes = [2, 32], strides = [1, 1]} : vector<2x96xf32> to vector<2x32xf32>
    %266 = vector.extract_strided_slice %256 {offsets = [0, 32], sizes = [2, 32], strides = [1, 1]} : vector<2x96xf32> to vector<2x32xf32>
    %267 = arith.addf %265, %266 : vector<2x32xf32>
    %268 = arith.negf %267 : vector<2x32xf32>
    %269 = math.exp %268 : vector<2x32xf32>
    %cst_64 = arith.constant 1.000000e+00 : f32
    %270 = vector.broadcast %cst_64 : f32 to vector<2x32xf32>
    %271 = arith.addf %270, %269 : vector<2x32xf32>
    %272 = arith.divf %270, %271 : vector<2x32xf32>
    %273 = vector.extract_strided_slice %254 {offsets = [0, 64], sizes = [2, 32], strides = [1, 1]} : vector<2x96xf32> to vector<2x32xf32>
    %274 = vector.extract_strided_slice %256 {offsets = [0, 64], sizes = [2, 32], strides = [1, 1]} : vector<2x96xf32> to vector<2x32xf32>
    %275 = arith.addf %274, %10 : vector<2x32xf32>
    %276 = arith.mulf %264, %275 : vector<2x32xf32>
    %277 = arith.addf %273, %276 : vector<2x32xf32>
    %278 = math.tanh %277 : vector<2x32xf32>
    %cst_65 = arith.constant 1.000000e+00 : f32
    %279 = vector.broadcast %cst_65 : f32 to vector<2x32xf32>
    %280 = arith.subf %279, %272 : vector<2x32xf32>
    %281 = arith.mulf %280, %278 : vector<2x32xf32>
    %282 = arith.mulf %272, %249 : vector<2x32xf32>
    %283 = arith.addf %281, %282 : vector<2x32xf32>
    %c8_i32 = arith.constant 8 : i32
    %c0_66 = arith.constant 0 : index
    %c0_67 = arith.constant 0 : index
    %284 = vector.load %arg8[%c0_66, %c0_67] : memref<2x32xf32, #tpu.memory_space<vmem>>, vector<2x32xf32>
    tpu.vector_store %arg8[%c0_66, %c0_67], %283 {strides = array<i32>} : memref<2x32xf32, #tpu.memory_space<vmem>>, vector<2x32xf32>,
    %c0_i32_68 = arith.constant 0 : i32
    %285 = arith.cmpi eq, %arg0, %c0_i32_68 : i32
    %286 = arith.extui %285 : i1 to i32
    %c0_i32_69 = arith.constant 0 : i32
    %287 = arith.cmpi ne, %286, %c0_i32_69 : i32
    scf.if %287 {
      %c0_70 = arith.constant 0 : index
      %c0_71 = arith.constant 0 : index
      %288 = vector.load %arg7[%c0_70, %c0_71] : memref<2x32xf32, #tpu.memory_space<vmem>>, vector<2x32xf32>
      tpu.vector_store %arg7[%c0_70, %c0_71], %283 {strides = array<i32>} : memref<2x32xf32, #tpu.memory_space<vmem>>, vector<2x32xf32>,
    } else {
    }
    return
  }
  func.func @transform_0(%arg0: i32) -> (i32, i32, i32) {
    %c0_i32 = arith.constant 0 : i32
    %c0_i32_0 = arith.constant 0 : i32
    %c0_i32_1 = arith.constant 0 : i32
    return %arg0, %c0_i32, %c0_i32_0 : i32, i32, i32
  }
  func.func @transform_1(%arg0: i32) -> (i32, i32) {
    %c0_i32 = arith.constant 0 : i32
    %c0_i32_0 = arith.constant 0 : i32
    %c0_i32_1 = arith.constant 0 : i32
    return %c0_i32, %c0_i32_0 : i32, i32
  }
  func.func @transform_2(%arg0: i32) -> (i32, i32) {
    %c0_i32 = arith.constant 0 : i32
    %c0_i32_0 = arith.constant 0 : i32
    %c0_i32_1 = arith.constant 0 : i32
    return %c0_i32, %c0_i32_0 : i32, i32
  }
  func.func @transform_3(%arg0: i32) -> (i32, i32) {
    %c0_i32 = arith.constant 0 : i32
    %c0_i32_0 = arith.constant 0 : i32
    %c0_i32_1 = arith.constant 0 : i32
    return %c0_i32, %c0_i32_0 : i32, i32
  }
  func.func @transform_4(%arg0: i32) -> (i32, i32) {
    %c0_i32 = arith.constant 0 : i32
    %c0_i32_0 = arith.constant 0 : i32
    %c0_i32_1 = arith.constant 0 : i32
    return %c0_i32, %c0_i32_0 : i32, i32
  }
  func.func @transform_5(%arg0: i32) -> (i32, i32) {
    %c0_i32 = arith.constant 0 : i32
    %c0_i32_0 = arith.constant 0 : i32
    %c0_i32_1 = arith.constant 0 : i32
    return %c0_i32, %c0_i32_0 : i32, i32
  }
  func.func @transform_6(%arg0: i32) -> (i32, i32) {
    %c0_i32 = arith.constant 0 : i32
    %c0_i32_0 = arith.constant 0 : i32
    %c0_i32_1 = arith.constant 0 : i32
    return %c0_i32, %c0_i32_0 : i32, i32
  }
}

</mosaic_0001>

<bundles_post_ra>
// kernel: gru_net_forward.1
= control target key start
LH: loop header
LB: loop body
LE: loop exit
PB: predicated region body
PF: predicated region fallthrough
CT: control target
= control target key end

     0   :  { %v1284_v0 = vmov 0.0   ;;  %vm29_vm0 = vcmask 254976   ;;  %vm1285_vm1 = vmmov 0   ;;  %vm58_vm2 = vcmask 130048   ;;  %s1527_s2 = inlined_call_operand.vmem [shape: bf16[32,96], index: 2, kind: input, shape index: {}]   ;;  %s1528_s1 = inlined_call_operand.vmem [shape: bf16[16,96], index: 1, kind: input, shape index: {}]   ;;  %s1529_s0 = inlined_call_operand.vmem [shape: bf16[8,2,16], index: 0, kind: input, shape index: {}]   ;;  %s1530_s5 = inlined_call_operand.vmem [shape: f32[2,32], index: 5, kind: input, shape index: {}]   ;;  %s1531_s4 = inlined_call_operand.vmem [shape: f32[1,32], index: 4, kind: input, shape index: {}]   ;;  %s1532_s3 = inlined_call_operand.vmem [shape: f32[1,96], index: 3, kind: input, shape index: {}]   ;;  %s1533_s6 = inlined_call_operand.vmem [shape: f32[2,32], index: 6, kind: output, shape index: {}]  }
   0x1   :  { %1122 = vmatprep.subr.bf16.mxu1 %v1284_v0  ;;  %v1328_v1 = vld [vmem:[%s1527_s2 + $0x8] sm:$0xff]   ;;  %1116 = vmatprep.subr.bf16.mxu0 %v1284_v0  ;;  %v1334_v2 = vld [vmem:[%s1528_s1] sm:$0xff]   ;;  %vm115_vm3 = vcmask 261120  }
   0x2   :  { %1118 = vmatprep.mubr.msk.bf16.mxu0 %vm1285_vm1, %v1284_v0  ;;  %1126 = vmatprep.mubr.msk.bf16.mxu1 %vm1285_vm1, %v1284_v0  ;;  %v1344_v3 = vld [vmem:[%s1527_s2] sm:$0xff]   ;;  %s1286_s2 = smov 64  }
   0x3   :  { %1123 = vmatpush3.bf16.msra.mxu1 %v1328_v1  ;;  %1117 = vmatpush3.bf16.msra.mxu0 %v1334_v2  ;;  %v51_v4 = vld [vmem:[%s1529_s0] sm:$0x1]  ;;  %v1048_v30 = vld [vmem:[%s1529_s0 + $0x1] sm:$0x1]  ;;  %v1052_v59 = vld [vmem:[%s1529_s0 + $0x2] sm:$0x1] }
   0x4   :  { %1124 = vmatprep.subr.bf16.mxu1 %v1284_v0  ;;  %v28_v5 = vld [vmem:[%s1530_s5] sm:$0x3]  ;;  %1130 = vmatprep.subr.bf16.mxu0 %v1284_v0 }
   0x5   :  { %v1041_v6 = vld [vmem:[%s1531_s4] ss:$0 sm:$0xff]  ;;  %30 = vst.msk [vmem:[#allocation2] sm:$0x3] %vm29_vm0, %v28_v5  ;;  %s1287_s4 = smov 32  }
   0x6   :  { %166 = vrot.lane.b32.xlu0 %v1041_v6, %s1286_s2  ;;  %1119 = vmatmul.mubr.msk.bf16.vlgmr.msra.gmra.mxu0 %vm58_vm2, %v51_v4  ;;  %v1381_v19 = vld [vmem:[%s1532_s3] ss:$0 sm:$0xff]  ;;  %s1288_s3 = smov 96  }
   0x7   :  { %1125 = vmatpush3.bf16.msra.mxu1 %v1344_v3  ;;  %1131 = vmatpush3.bf16.msra.mxu0 %v1334_v2 }
   0x8   :  { %1136 = vmatprep.subr.bf16.mxu1 %v1284_v0  ;;  %1132 = vmatprep.mubr.msk.bf16.mxu0 %vm1285_vm1, %v1284_v0 }
   0x9   :  { %1144 = vmatprep.subr.bf16.mxu0 %v1284_v0 }
   0xc   :  { %v50_v7 = vld [vmem:[#allocation2] sm:$0x3] }
   0xd   :  { %v102_v8 = vpack.c.bf16 %v50_v7, %v50_v7 }
   0xe   :  { %1133 = vmatmul.mubr.msk.bf16.vlgmr.msra.gmra.mxu0 %vm58_vm2, %v1048_v30 }
   0xf   :  { %1127 = vmatmul.mubr.msk.bf16.vlgmr.msra.gmra.mxu1 %vm115_vm3, %v102_v8  ;;  %1145 = vmatpush3.bf16.msra.mxu0 %v1334_v2 }
  0x10   :  { %1137 = vmatpush3.bf16.msra.mxu1 %v1328_v1  ;;  %1140 = vmatprep.mubr.msk.bf16.mxu1 %vm1285_vm1, %v1284_v0 }
  0x11   :  { %1138 = vmatprep.subr.bf16.mxu1 %v1284_v0  ;;  %1146 = vmatprep.mubr.msk.bf16.mxu0 %vm1285_vm1, %v1284_v0 }
  0x12   :  { %1158 = vmatprep.subr.bf16.mxu0 %v1284_v0 }
  0x14   :  { %1139 = vmatpush3.bf16.msra.mxu1 %v1344_v3 }
  0x15   :  { %1150 = vmatprep.subr.bf16.mxu1 %v1284_v0 }
  0x16   :  { %1147 = vmatmul.mubr.msk.bf16.vlgmr.msra.gmra.mxu0 %vm58_vm2, %v1052_v59 }
  0x17   :  { %1159 = vmatpush3.bf16.msra.mxu0 %v1334_v2  ;;  %1160 = vmatprep.mubr.msk.bf16.mxu0 %vm1285_vm1, %v1284_v0 }
  0x18   :  { %1172 = vmatprep.subr.bf16.mxu0 %v1284_v0 }
  0x78   :  { %v1374_v12 = vpop.permute.xlu0 %166 }
  0xc6   :  { %v96_v9 = vpop.f32.mrf.mxu0 }
  0xc7   :  { %v97_v20 = vadd.f32 %v1381_v19, %v96_v9 }
  0xc8   :  { %v1120_v10 = vpop.f32.mrf.mxu0 }
  0xca   :  { %v99_v11 = vpop.f32.mrf.mxu0 }
  0xcc   :  { %v1121_v13 = vpop.f32.mrf.mxu0 }
  0xce   :  { %v232_v39 = vpop.f32.mrf.mxu0 }
  0xcf   :  { %v153_v14 = vpop.f32.mrf.mxu1  ;;  %v233_v49 = vadd.f32 %v1381_v19, %v232_v39 }
  0xd0   :  { %v169_v15 = vadd.f32 %v1374_v12, %v153_v14  ;;  %v159_v21 = vadd.f32 %v153_v14, %v97_v20  ;;  %v1134_v40 = vpop.f32.mrf.mxu0 }
  0xd1   :  { %v1128_v16 = vpop.f32.mrf.mxu1 }
  0xd2   :  { %171 = vrot.lane.b32.xlu0 %v169_v15, %s1286_s2  ;;  %v1047_v22 = vmul.f32 -1.442695, %v159_v21  ;;  %v235_v41 = vpop.f32.mrf.mxu0 }
  0xd3   :  { %v156_v17 = vpop.f32.mrf.mxu1 }
  0xd4   :  { %1236 = vpow2.f32 %v1047_v22  ;;  %v1135_v42 = vpop.f32.mrf.mxu0 }
  0xd5   :  { %v1129_v18 = vpop.f32.mrf.mxu1 }
  0xd6   :  { %188 = vrot.lane.b32.xlu0 %v50_v7, %s1287_s4  ;;  %v351_v7 = vpop.f32.mrf.mxu0 }
  0xd7   :  { %v352_v18 = vadd.f32 %v1381_v19, %v351_v7 }
  0xd8   :  { %v1148_v8 = vpop.f32.mrf.mxu0 }
  0xda   :  { %v354_v9 = vpop.f32.mrf.mxu0 }
  0xdc   :  { %v1149_v10 = vpop.f32.mrf.mxu0 }
  0xe1   :  { %v1237_v23 = vpop.eup %1236 }
  0xe2   :  { %v163_v24 = vadd.f32 1.0, %v1237_v23 }
  0xe4   :  { %1238 = vrcp.f32 %v163_v24 }
  0xf1   :  { %v1239_v25 = vpop.eup %1238 }
  0xf2   :  { %v181_v33 = vsub.f32 1.0, %v1239_v25 }
 0x144   :  { %v172_v26 = vpop.permute.xlu0 %171 }
 0x145   :  { %v174_v27 = vmul.f32 %v1239_v25, %v172_v26 }
 0x147   :  { %176 = vrot.lane.b32.xlu1 %v174_v27, %s1286_s2 }
 0x148   :  { %v189_v32 = vpop.permute.xlu0 %188 }
 0x149   :  { %v191_v35 = vmul.f32 %v1239_v25, %v189_v32 }
 0x1b9   :  { %v177_v28 = vpop.permute.xlu1 %176 }
 0x1ba   :  { %v179_v29 = vadd.f32 %v177_v28, %v97_v20 }
 0x1bc   :  { %1240 = vtanh.f32 %v179_v29  ;;  %v1056_v29 = vld [vmem:[%s1529_s0 + $0x3] sm:$0x1] }
 0x1bd   :  { %1161 = vmatmul.mubr.msk.bf16.vlgmr.msra.gmra.mxu0 %vm58_vm2, %v1056_v29 }
 0x1be   :  { %1173 = vmatpush3.bf16.msra.mxu0 %v1334_v2  ;;  %1174 = vmatprep.mubr.msk.bf16.mxu0 %vm1285_vm1, %v1284_v0 }
 0x1bf   :  { %1186 = vmatprep.subr.bf16.mxu0 %v1284_v0 }
 0x1c9   :  { %v1241_v31 = vpop.eup %1240 }
 0x1ca   :  { %183 = vrot.lane.b32.xlu1 %v1241_v31, %s1288_s3 }
 0x23c   :  { %v184_v34 = vpop.permute.xlu1 %183 }
 0x23d   :  { %v186_v36 = vmul.f32 %v184_v34, %v181_v33 }
 0x23f   :  { %v192_v37 = vadd.f32 %v191_v35, %v186_v36 }
 0x241   :  { %v238_v38 = vpack.c.bf16 %v192_v37, %v192_v37 }
 0x243   :  { %240 = vrot.lane.b32.xlu1 %v238_v38, %s1288_s3 }
 0x2b5   :  { %v241_v43 = vpop.permute.xlu1 %240 }
 0x2b6   :  { %1141 = vmatmul.mubr.msk.bf16.vlgmr.msra.gmra.mxu1 %vm115_vm3, %v241_v43 }
 0x2b7   :  { %1151 = vmatpush3.bf16.msra.mxu1 %v1328_v1  ;;  %1154 = vmatprep.mubr.msk.bf16.mxu1 %vm1285_vm1, %v1284_v0 }
 0x2b8   :  { %1152 = vmatprep.subr.bf16.mxu1 %v1284_v0 }
 0x2bb   :  { %1153 = vmatpush3.bf16.msra.mxu1 %v1344_v3 }
 0x2bc   :  { %1164 = vmatprep.subr.bf16.mxu1 %v1284_v0 }
 0x376   :  { %v279_v44 = vpop.f32.mrf.mxu1 }
 0x377   :  { %v292_v45 = vadd.f32 %v279_v44, %v1374_v12  ;;  %v285_v50 = vadd.f32 %v279_v44, %v233_v49 }
 0x378   :  { %v1142_v46 = vpop.f32.mrf.mxu1 }
 0x379   :  { %294 = vrot.lane.b32.xlu0 %v292_v45, %s1286_s2  ;;  %v1051_v51 = vmul.f32 -1.442695, %v285_v50 }
 0x37a   :  { %v282_v47 = vpop.f32.mrf.mxu1 }
 0x37b   :  { %1242 = vpow2.f32 %v1051_v51 }
 0x37c   :  { %v1143_v48 = vpop.f32.mrf.mxu1 }
 0x388   :  { %v1243_v52 = vpop.eup %1242 }
 0x389   :  { %v289_v53 = vadd.f32 1.0, %v1243_v52 }
 0x38b   :  { %1244 = vrcp.f32 %v289_v53 }
 0x398   :  { %v1245_v54 = vpop.eup %1244 }
 0x399   :  { %v304_v61 = vsub.f32 1.0, %v1245_v54  ;;  %v310_v63 = vmul.f32 %v1245_v54, %v192_v37  ;;  %v470_v37 = vpop.f32.mrf.mxu0 }
 0x39a   :  { %v471_v47 = vadd.f32 %v1381_v19, %v470_v37 }
 0x39b   :  { %v1162_v38 = vpop.f32.mrf.mxu0 }
 0x39d   :  { %v473_v39 = vpop.f32.mrf.mxu0 }
 0x39f   :  { %v1163_v40 = vpop.f32.mrf.mxu0 }
 0x3eb   :  { %v295_v55 = vpop.permute.xlu0 %294 }
 0x3ec   :  { %v297_v56 = vmul.f32 %v1245_v54, %v295_v55 }
 0x3ee   :  { %299 = vrot.lane.b32.xlu1 %v297_v56, %s1286_s2 }
 0x460   :  { %v300_v57 = vpop.permute.xlu1 %299 }
 0x461   :  { %v302_v58 = vadd.f32 %v300_v57, %v233_v49  ;;  %v1060_v57 = vld [vmem:[%s1529_s0 + $0x4] sm:$0x1] }
 0x462   :  { %1175 = vmatmul.mubr.msk.bf16.vlgmr.msra.gmra.mxu0 %vm58_vm2, %v1060_v57 }
 0x463   :  { %1246 = vtanh.f32 %v302_v58  ;;  %1187 = vmatpush3.bf16.msra.mxu0 %v1334_v2  ;;  %1188 = vmatprep.mubr.msk.bf16.mxu0 %vm1285_vm1, %v1284_v0 }
 0x464   :  { %1200 = vmatprep.subr.bf16.mxu0 %v1284_v0 }
 0x470   :  { %v1247_v60 = vpop.eup %1246 }
 0x471   :  { %306 = vrot.lane.b32.xlu0 %v1247_v60, %s1288_s3 }
 0x4e3   :  { %v307_v62 = vpop.permute.xlu0 %306 }
 0x4e4   :  { %v309_v4 = vmul.f32 %v307_v62, %v304_v61 }
 0x4e6   :  { %v311_v5 = vadd.f32 %v310_v63, %v309_v4 }
 0x4e8   :  { %v357_v6 = vpack.c.bf16 %v311_v5, %v311_v5 }
 0x4ea   :  { %359 = vrot.lane.b32.xlu1 %v357_v6, %s1288_s3 }
 0x55c   :  { %v360_v11 = vpop.permute.xlu1 %359 }
 0x55d   :  { %1155 = vmatmul.mubr.msk.bf16.vlgmr.msra.gmra.mxu1 %vm115_vm3, %v360_v11 }
 0x55e   :  { %1165 = vmatpush3.bf16.msra.mxu1 %v1328_v1  ;;  %1168 = vmatprep.mubr.msk.bf16.mxu1 %vm1285_vm1, %v1284_v0 }
 0x55f   :  { %1166 = vmatprep.subr.bf16.mxu1 %v1284_v0 }
 0x562   :  { %1167 = vmatpush3.bf16.msra.mxu1 %v1344_v3 }
 0x563   :  { %1178 = vmatprep.subr.bf16.mxu1 %v1284_v0 }
 0x61d   :  { %v398_v13 = vpop.f32.mrf.mxu1 }
 0x61e   :  { %v411_v14 = vadd.f32 %v398_v13, %v1374_v12  ;;  %v404_v20 = vadd.f32 %v398_v13, %v352_v18 }
 0x61f   :  { %v1156_v15 = vpop.f32.mrf.mxu1 }
 0x620   :  { %413 = vrot.lane.b32.xlu0 %v411_v14, %s1286_s2  ;;  %v1055_v21 = vmul.f32 -1.442695, %v404_v20 }
 0x621   :  { %v401_v16 = vpop.f32.mrf.mxu1 }
 0x622   :  { %1248 = vpow2.f32 %v1055_v21 }
 0x623   :  { %v1157_v17 = vpop.f32.mrf.mxu1 }
 0x62f   :  { %v1249_v22 = vpop.eup %1248 }
 0x630   :  { %v408_v23 = vadd.f32 1.0, %v1249_v22 }
 0x632   :  { %1250 = vrcp.f32 %v408_v23 }
 0x63f   :  { %v1251_v24 = vpop.eup %1250 }
 0x640   :  { %v423_v31 = vsub.f32 1.0, %v1251_v24  ;;  %v429_v33 = vmul.f32 %v1251_v24, %v311_v5  ;;  %v589_v5 = vpop.f32.mrf.mxu0 }
 0x641   :  { %v590_v16 = vadd.f32 %v1381_v19, %v589_v5 }
 0x642   :  { %v1176_v6 = vpop.f32.mrf.mxu0 }
 0x644   :  { %v592_v7 = vpop.f32.mrf.mxu0 }
 0x646   :  { %v1177_v8 = vpop.f32.mrf.mxu0 }
 0x692   :  { %v414_v25 = vpop.permute.xlu0 %413 }
 0x693   :  { %v416_v26 = vmul.f32 %v1251_v24, %v414_v25 }
 0x695   :  { %418 = vrot.lane.b32.xlu1 %v416_v26, %s1286_s2 }
 0x707   :  { %v419_v27 = vpop.permute.xlu1 %418 }
 0x708   :  { %v421_v28 = vadd.f32 %v419_v27, %v352_v18  ;;  %v1064_v27 = vld [vmem:[%s1529_s0 + $0x5] sm:$0x1] }
 0x709   :  { %1189 = vmatmul.mubr.msk.bf16.vlgmr.msra.gmra.mxu0 %vm58_vm2, %v1064_v27 }
 0x70a   :  { %1252 = vtanh.f32 %v421_v28  ;;  %1201 = vmatpush3.bf16.msra.mxu0 %v1334_v2  ;;  %1202 = vmatprep.mubr.msk.bf16.mxu0 %vm1285_vm1, %v1284_v0 }
 0x70b   :  { %1214 = vmatprep.subr.bf16.mxu0 %v1284_v0 }
 0x717   :  { %v1253_v30 = vpop.eup %1252 }
 0x718   :  { %425 = vrot.lane.b32.xlu0 %v1253_v30, %s1288_s3 }
 0x78a   :  { %v426_v32 = vpop.permute.xlu0 %425 }
 0x78b   :  { %v428_v34 = vmul.f32 %v426_v32, %v423_v31 }
 0x78d   :  { %v430_v35 = vadd.f32 %v429_v33, %v428_v34 }
 0x78f   :  { %v476_v36 = vpack.c.bf16 %v430_v35, %v430_v35 }
 0x791   :  { %478 = vrot.lane.b32.xlu1 %v476_v36, %s1288_s3 }
 0x803   :  { %v479_v41 = vpop.permute.xlu1 %478 }
 0x804   :  { %1169 = vmatmul.mubr.msk.bf16.vlgmr.msra.gmra.mxu1 %vm115_vm3, %v479_v41 }
 0x805   :  { %1179 = vmatpush3.bf16.msra.mxu1 %v1328_v1  ;;  %1182 = vmatprep.mubr.msk.bf16.mxu1 %vm1285_vm1, %v1284_v0 }
 0x806   :  { %1180 = vmatprep.subr.bf16.mxu1 %v1284_v0 }
 0x809   :  { %1181 = vmatpush3.bf16.msra.mxu1 %v1344_v3 }
 0x80a   :  { %1192 = vmatprep.subr.bf16.mxu1 %v1284_v0 }
 0x8c4   :  { %v517_v42 = vpop.f32.mrf.mxu1 }
 0x8c5   :  { %v530_v43 = vadd.f32 %v517_v42, %v1374_v12  ;;  %v523_v48 = vadd.f32 %v517_v42, %v471_v47 }
 0x8c6   :  { %v1170_v44 = vpop.f32.mrf.mxu1 }
 0x8c7   :  { %532 = vrot.lane.b32.xlu0 %v530_v43, %s1286_s2  ;;  %v1059_v49 = vmul.f32 -1.442695, %v523_v48 }
 0x8c8   :  { %v520_v45 = vpop.f32.mrf.mxu1 }
 0x8c9   :  { %1254 = vpow2.f32 %v1059_v49 }
 0x8ca   :  { %v1171_v46 = vpop.f32.mrf.mxu1 }
 0x8d6   :  { %v1255_v50 = vpop.eup %1254 }
 0x8d7   :  { %v527_v51 = vadd.f32 1.0, %v1255_v50 }
 0x8d9   :  { %1256 = vrcp.f32 %v527_v51 }
 0x8e6   :  { %v1257_v52 = vpop.eup %1256 }
 0x8e7   :  { %v542_v59 = vsub.f32 1.0, %v1257_v52  ;;  %v548_v61 = vmul.f32 %v1257_v52, %v430_v35  ;;  %v708_v35 = vpop.f32.mrf.mxu0 }
 0x8e8   :  { %v709_v45 = vadd.f32 %v1381_v19, %v708_v35 }
 0x8e9   :  { %v1190_v36 = vpop.f32.mrf.mxu0 }
 0x8eb   :  { %v711_v37 = vpop.f32.mrf.mxu0 }
 0x8ed   :  { %v1191_v38 = vpop.f32.mrf.mxu0 }
 0x939   :  { %v533_v53 = vpop.permute.xlu0 %532 }
 0x93a   :  { %v535_v54 = vmul.f32 %v1257_v52, %v533_v53 }
 0x93c   :  { %537 = vrot.lane.b32.xlu1 %v535_v54, %s1286_s2 }
 0x9ae   :  { %v538_v55 = vpop.permute.xlu1 %537 }
 0x9af   :  { %v540_v56 = vadd.f32 %v538_v55, %v471_v47  ;;  %v1068_v55 = vld [vmem:[%s1529_s0 + $0x6] sm:$0x1] }
 0x9b0   :  { %1203 = vmatmul.mubr.msk.bf16.vlgmr.msra.gmra.mxu0 %vm58_vm2, %v1068_v55 }
 0x9b1   :  { %1258 = vtanh.f32 %v540_v56  ;;  %1215 = vmatpush3.bf16.msra.mxu0 %v1334_v2  ;;  %1216 = vmatprep.mubr.msk.bf16.mxu0 %vm1285_vm1, %v1284_v0 }
 0x9be   :  { %v1259_v58 = vpop.eup %1258 }
 0x9bf   :  { %544 = vrot.lane.b32.xlu0 %v1259_v58, %s1288_s3 }
 0xa31   :  { %v545_v60 = vpop.permute.xlu0 %544 }
 0xa32   :  { %v547_v62 = vmul.f32 %v545_v60, %v542_v59 }
 0xa34   :  { %v549_v63 = vadd.f32 %v548_v61, %v547_v62 }
 0xa36   :  { %v595_v4 = vpack.c.bf16 %v549_v63, %v549_v63 }
 0xa38   :  { %597 = vrot.lane.b32.xlu1 %v595_v4, %s1288_s3 }
 0xaaa   :  { %v598_v9 = vpop.permute.xlu1 %597 }
 0xaab   :  { %1183 = vmatmul.mubr.msk.bf16.vlgmr.msra.gmra.mxu1 %vm115_vm3, %v598_v9 }
 0xaac   :  { %1193 = vmatpush3.bf16.msra.mxu1 %v1328_v1  ;;  %1196 = vmatprep.mubr.msk.bf16.mxu1 %vm1285_vm1, %v1284_v0 }
 0xaad   :  { %1194 = vmatprep.subr.bf16.mxu1 %v1284_v0 }
 0xab0   :  { %1195 = vmatpush3.bf16.msra.mxu1 %v1344_v3 }
 0xab1   :  { %1206 = vmatprep.subr.bf16.mxu1 %v1284_v0 }
 0xb6b   :  { %v636_v10 = vpop.f32.mrf.mxu1 }
 0xb6c   :  { %v649_v11 = vadd.f32 %v636_v10, %v1374_v12  ;;  %v642_v17 = vadd.f32 %v636_v10, %v590_v16 }
 0xb6d   :  { %v1184_v13 = vpop.f32.mrf.mxu1 }
 0xb6e   :  { %651 = vrot.lane.b32.xlu0 %v649_v11, %s1286_s2  ;;  %v1063_v18 = vmul.f32 -1.442695, %v642_v17 }
 0xb6f   :  { %v639_v14 = vpop.f32.mrf.mxu1 }
 0xb70   :  { %1260 = vpow2.f32 %v1063_v18 }
 0xb71   :  { %v1185_v15 = vpop.f32.mrf.mxu1 }
 0xb7d   :  { %v1261_v20 = vpop.eup %1260 }
 0xb7e   :  { %v646_v21 = vadd.f32 1.0, %v1261_v20 }
 0xb80   :  { %1262 = vrcp.f32 %v646_v21  ;;  %v1072_v21 = vld [vmem:[%s1529_s0 + $0x7] sm:$0x1] }
 0xb81   :  { %1217 = vmatmul.mubr.msk.bf16.vlgmr.msra.gmra.mxu0 %vm58_vm2, %v1072_v21 }
 0xb8d   :  { %v1263_v22 = vpop.eup %1262 }
 0xb8e   :  { %v661_v29 = vsub.f32 1.0, %v1263_v22  ;;  %v667_v31 = vmul.f32 %v1263_v22, %v549_v63  ;;  %v827_v63 = vpop.f32.mrf.mxu0 }
 0xb8f   :  { %v828_v13 = vadd.f32 %v1381_v19, %v827_v63 }
 0xb90   :  { %v1204_v4 = vpop.f32.mrf.mxu0 }
 0xb92   :  { %v830_v5 = vpop.f32.mrf.mxu0 }
 0xb94   :  { %v1205_v6 = vpop.f32.mrf.mxu0 }
 0xbe0   :  { %v652_v23 = vpop.permute.xlu0 %651 }
 0xbe1   :  { %v654_v24 = vmul.f32 %v1263_v22, %v652_v23 }
 0xbe3   :  { %656 = vrot.lane.b32.xlu1 %v654_v24, %s1286_s2 }
 0xc55   :  { %v657_v25 = vpop.permute.xlu1 %656 }
 0xc56   :  { %v659_v26 = vadd.f32 %v657_v25, %v590_v16 }
 0xc58   :  { %1264 = vtanh.f32 %v659_v26 }
 0xc65   :  { %v1265_v28 = vpop.eup %1264 }
 0xc66   :  { %663 = vrot.lane.b32.xlu0 %v1265_v28, %s1288_s3 }
 0xcd8   :  { %v664_v30 = vpop.permute.xlu0 %663 }
 0xcd9   :  { %v666_v32 = vmul.f32 %v664_v30, %v661_v29  ;;  %v946_v29 = vpop.f32.mrf.mxu0 }
 0xcdb   :  { %v668_v33 = vadd.f32 %v667_v31, %v666_v32  ;;  %v1218_v30 = vpop.f32.mrf.mxu0 }
 0xcdd   :  { %v714_v34 = vpack.c.bf16 %v668_v33, %v668_v33  ;;  %v949_v31 = vpop.f32.mrf.mxu0 }
 0xcdf   :  { %716 = vrot.lane.b32.xlu1 %v714_v34, %s1288_s3  ;;  %v1219_v32 = vpop.f32.mrf.mxu0 }
 0xd51   :  { %v717_v39 = vpop.permute.xlu1 %716 }
 0xd52   :  { %1197 = vmatmul.mubr.msk.bf16.vlgmr.msra.gmra.mxu1 %vm115_vm3, %v717_v39  ;;  %v947_v39 = vadd.f32 %v1381_v19, %v946_v29 }
 0xd53   :  { %1207 = vmatpush3.bf16.msra.mxu1 %v1328_v1  ;;  %1210 = vmatprep.mubr.msk.bf16.mxu1 %vm1285_vm1, %v1284_v0 }
 0xd54   :  { %1208 = vmatprep.subr.bf16.mxu1 %v1284_v0 }
 0xd57   :  { %1209 = vmatpush3.bf16.msra.mxu1 %v1344_v3 }
 0xd58   :  { %1220 = vmatprep.subr.bf16.mxu1 %v1284_v0 }
 0xe12   :  { %v755_v40 = vpop.f32.mrf.mxu1 }
 0xe13   :  { %v768_v41 = vadd.f32 %v755_v40, %v1374_v12  ;;  %v761_v46 = vadd.f32 %v755_v40, %v709_v45 }
 0xe14   :  { %v1198_v42 = vpop.f32.mrf.mxu1 }
 0xe15   :  { %770 = vrot.lane.b32.xlu0 %v768_v41, %s1286_s2  ;;  %v1067_v47 = vmul.f32 -1.442695, %v761_v46 }
 0xe16   :  { %v758_v43 = vpop.f32.mrf.mxu1 }
 0xe17   :  { %1266 = vpow2.f32 %v1067_v47 }
 0xe18   :  { %v1199_v44 = vpop.f32.mrf.mxu1 }
 0xe24   :  { %v1267_v48 = vpop.eup %1266 }
 0xe25   :  { %v765_v49 = vadd.f32 1.0, %v1267_v48 }
 0xe27   :  { %1268 = vrcp.f32 %v765_v49 }
 0xe34   :  { %v1269_v50 = vpop.eup %1268 }
 0xe35   :  { %v780_v57 = vsub.f32 1.0, %v1269_v50  ;;  %v786_v59 = vmul.f32 %v1269_v50, %v668_v33 }
 0xe87   :  { %v771_v51 = vpop.permute.xlu0 %770 }
 0xe88   :  { %v773_v52 = vmul.f32 %v1269_v50, %v771_v51 }
 0xe8a   :  { %775 = vrot.lane.b32.xlu1 %v773_v52, %s1286_s2 }
 0xefc   :  { %v776_v53 = vpop.permute.xlu1 %775 }
 0xefd   :  { %v778_v54 = vadd.f32 %v776_v53, %v709_v45 }
 0xeff   :  { %1270 = vtanh.f32 %v778_v54 }
 0xf0c   :  { %v1271_v56 = vpop.eup %1270 }
 0xf0d   :  { %782 = vrot.lane.b32.xlu0 %v1271_v56, %s1288_s3 }
 0xf7f   :  { %v783_v58 = vpop.permute.xlu0 %782 }
 0xf80   :  { %v785_v60 = vmul.f32 %v783_v58, %v780_v57 }
 0xf82   :  { %v787_v61 = vadd.f32 %v786_v59, %v785_v60 }
 0xf84   :  { %v833_v62 = vpack.c.bf16 %v787_v61, %v787_v61 }
 0xf86   :  { %835 = vrot.lane.b32.xlu1 %v833_v62, %s1288_s3 }
 0xff8   :  { %v836_v7 = vpop.permute.xlu1 %835 }
 0xff9   :  { %1211 = vmatmul.mubr.msk.bf16.vlgmr.msra.gmra.mxu1 %vm115_vm3, %v836_v7 }
 0xffa   :  { %1221 = vmatpush3.bf16.msra.mxu1 %v1328_v1  ;;  %1224 = vmatprep.mubr.msk.bf16.mxu1 %vm1285_vm1, %v1284_v0 }
 0xffb   :  { %1222 = vmatprep.subr.bf16.mxu1 %v1284_v0 }
 0xffe   :  { %1223 = vmatpush3.bf16.msra.mxu1 %v1344_v3 }
0x10b9   :  { %v874_v2 = vpop.f32.mrf.mxu1 }
0x10ba   :  { %v887_v8 = vadd.f32 %v874_v2, %v1374_v12  ;;  %v880_v14 = vadd.f32 %v874_v2, %v828_v13 }
0x10bb   :  { %v1212_v9 = vpop.f32.mrf.mxu1 }
0x10bc   :  { %889 = vrot.lane.b32.xlu0 %v887_v8, %s1286_s2  ;;  %v1071_v15 = vmul.f32 -1.442695, %v880_v14 }
0x10bd   :  { %v877_v10 = vpop.f32.mrf.mxu1 }
0x10be   :  { %1272 = vpow2.f32 %v1071_v15 }
0x10bf   :  { %v1213_v11 = vpop.f32.mrf.mxu1 }
0x10cb   :  { %v1273_v1 = vpop.eup %1272 }
0x10cc   :  { %v884_v16 = vadd.f32 1.0, %v1273_v1 }
0x10ce   :  { %1274 = vrcp.f32 %v884_v16 }
0x10db   :  { %v1275_v17 = vpop.eup %1274 }
0x10dc   :  { %v899_v23 = vsub.f32 1.0, %v1275_v17  ;;  %v905_v25 = vmul.f32 %v1275_v17, %v787_v61 }
0x112e   :  { %v890_v0 = vpop.permute.xlu0 %889 }
0x112f   :  { %v892_v18 = vmul.f32 %v1275_v17, %v890_v0 }
0x1131   :  { %894 = vrot.lane.b32.xlu1 %v892_v18, %s1286_s2 }
0x11a3   :  { %v895_v3 = vpop.permute.xlu1 %894 }
0x11a4   :  { %v897_v20 = vadd.f32 %v895_v3, %v828_v13 }
0x11a6   :  { %1276 = vtanh.f32 %v897_v20 }
0x11b3   :  { %v1277_v22 = vpop.eup %1276 }
0x11b4   :  { %901 = vrot.lane.b32.xlu0 %v1277_v22, %s1288_s3 }
0x1226   :  { %v902_v24 = vpop.permute.xlu0 %901 }
0x1227   :  { %v904_v26 = vmul.f32 %v902_v24, %v899_v23 }
0x1229   :  { %v906_v27 = vadd.f32 %v905_v25, %v904_v26 }
0x122b   :  { %v952_v28 = vpack.c.bf16 %v906_v27, %v906_v27 }
0x122d   :  { %954 = vrot.lane.b32.xlu1 %v952_v28, %s1288_s3 }
0x129f   :  { %v955_v33 = vpop.permute.xlu1 %954 }
0x12a0   :  { %1225 = vmatmul.mubr.msk.bf16.vlgmr.msra.gmra.mxu1 %vm115_vm3, %v955_v33 }
0x1360   :  { %v993_v34 = vpop.f32.mrf.mxu1 }
0x1361   :  { %v1006_v35 = vadd.f32 %v993_v34, %v1374_v12  ;;  %v999_v40 = vadd.f32 %v993_v34, %v947_v39 }
0x1362   :  { %v1226_v36 = vpop.f32.mrf.mxu1 }
0x1363   :  { %1008 = vrot.lane.b32.xlu0 %v1006_v35, %s1286_s2  ;;  %v1075_v41 = vmul.f32 -1.442695, %v999_v40 }
0x1364   :  { %v996_v37 = vpop.f32.mrf.mxu1 }
0x1365   :  { %1278 = vpow2.f32 %v1075_v41 }
0x1366   :  { %v1227_v38 = vpop.f32.mrf.mxu1 }
0x1372   :  { %v1279_v42 = vpop.eup %1278 }
0x1373   :  { %v1003_v43 = vadd.f32 1.0, %v1279_v42 }
0x1375   :  { %1280 = vrcp.f32 %v1003_v43 }
0x1382   :  { %v1281_v44 = vpop.eup %1280 }
0x1383   :  { %v1018_v49 = vsub.f32 1.0, %v1281_v44  ;;  %v1024_v19 = vmul.f32 %v1281_v44, %v906_v27 }
0x13d5   :  { %v1009_v45 = vpop.permute.xlu0 %1008 }
0x13d6   :  { %v1011_v46 = vmul.f32 %v1281_v44, %v1009_v45 }
0x13d8   :  { %1013 = vrot.lane.b32.xlu1 %v1011_v46, %s1286_s2 }
0x144a   :  { %v1014_v47 = vpop.permute.xlu1 %1013 }
0x144b   :  { %v1016_v12 = vadd.f32 %v1014_v47, %v947_v39 }
0x144d   :  { %1282 = vtanh.f32 %v1016_v12 }
0x145a   :  { %v1283_v48 = vpop.eup %1282 }
0x145b   :  { %1020 = vrot.lane.b32.xlu0 %v1283_v48, %s1288_s3 }
0x14cd   :  { %v1021_v50 = vpop.permute.xlu0 %1020 }
0x14ce   :  { %v1023_v51 = vmul.f32 %v1021_v50, %v1018_v49 }
0x14d0   :  { %v1025_v52 = vadd.f32 %v1024_v19, %v1023_v51 }
0x14d2   :  { %1027 = vrot.lane.b32.xlu1 %v1025_v52, %s1288_s3 }
0x1544   :  { %v1028_v53 = vpop.permute.xlu1 %1027 }
0x1545   :  { %1031 = vst.msk [vmem:[#allocation2] sm:$0x3] %vm29_vm0, %v1028_v53  ;;  %1035 = vst.msk [vmem:[%s1533_s6] sm:$0x3] %vm29_vm0, %v1028_v53 }

</bundles_post_ra>
